<compile_context>
chip_gen: v7x
topology: tpu7x:2x2x1
jax: 0.10.0
libtpu: 0.0.40
codegen_flags: <defaults>
</compile_context>

<pallas_src>
import jax
import jax.numpy as jnp
from jax.experimental import pallas as pl
from jax.experimental.pallas import tpu as pltpu

NUM_CLASSES = 8
HIDDEN_DIM = 256
IN_FEATURES = 1536   # efficientnet_b3 num_features
OUT_PAD = 128        # lane-dense padded logits width


def _round_up(n, m):
    return ((n + m - 1) // m) * m


def baseline_mlp_head_kernel(x_ref, wf_ref, b1_ref, w2_ref, b2_ref, o_ref):
    # x_ref: [TB, C, HW] bf16. Pool in f32; the mean's 1/(H*W) is folded into wf.
    pooled = jnp.sum(x_ref[...].astype(jnp.float32), axis=-1)            # [TB, C]

    # (backbone-proj ∘ Linear1) fused: h = relu(pooled @ wf + b1)
    h = jnp.dot(pooled.astype(jnp.bfloat16), wf_ref[...],
                preferred_element_type=jnp.float32) + b1_ref[...]        # [TB, HIDDEN]
    h = jnp.maximum(h, 0.0)                                              # ReLU

    # Linear2 into a lane-dense 128-wide padded output block.
    out = jnp.dot(h.astype(jnp.bfloat16), w2_ref[...],
                  preferred_element_type=jnp.float32) + b2_ref[...]      # [TB, OUT_PAD]
    o_ref[...] = out.astype(o_ref.dtype)


def baseline_mlp_head(x, wp, w1, b1, w2, b2):
    """x: [B, C, H, W] float32. Returns logits [B, NUM_CLASSES] float32."""
    B, C, H, W = x.shape
    HW = H * W

    # ---- one-time parameter prep (constant-folded by XLA under jit) --------
    # Dropout is identity at eval => wp ∘ w1 collapses; fold 1/(H*W) of the mean.
    w_fused = ((wp @ w1) / float(HW)).astype(jnp.bfloat16)                # [C, HIDDEN]
    b1_r = b1.reshape(1, HIDDEN_DIM).astype(jnp.float32)
    w2_pad = jnp.zeros((HIDDEN_DIM, OUT_PAD), jnp.bfloat16)
    w2_pad = w2_pad.at[:, :NUM_CLASSES].set(w2.astype(jnp.bfloat16))
    b2_pad = jnp.zeros((1, OUT_PAD), jnp.float32).at[0, :NUM_CLASSES].set(b2)

    # ---- batch tiling -------------------------------------------------------
    TB = 128 if B >= 128 else _round_up(B, 8)
    B_pad = _round_up(B, TB)
    x3 = x.reshape(B, C, HW).astype(jnp.bfloat16)
    if B_pad != B:
        x3 = jnp.pad(x3, ((0, B_pad - B), (0, 0), (0, 0)))
    grid = (B_pad // TB,)

    flops = 2 * B_pad * (C * HW + C * HIDDEN_DIM + HIDDEN_DIM * OUT_PAD)
    bytes_accessed = (x3.size * 2 + w_fused.size * 2 + b1_r.size * 4
                      + w2_pad.size * 2 + b2_pad.size * 4 + B_pad * OUT_PAD * 4)

    out_full = pl.pallas_call(
        baseline_mlp_head_kernel,
        out_shape=jax.ShapeDtypeStruct((B_pad, OUT_PAD), jnp.float32),
        grid_spec=pltpu.PrefetchScalarGridSpec(
            num_scalar_prefetch=0,
            grid=grid,
            in_specs=[
                pl.BlockSpec((TB, C, HW), lambda i: (i, 0, 0)),          # x tile (pipelined)
                pl.BlockSpec((C, HIDDEN_DIM), lambda i: (0, 0)),         # fused weight (resident)
                pl.BlockSpec((1, HIDDEN_DIM), lambda i: (0, 0)),         # b1 (resident)
                pl.BlockSpec((HIDDEN_DIM, OUT_PAD), lambda i: (0, 0)),   # w2 padded (resident)
                pl.BlockSpec((1, OUT_PAD), lambda i: (0, 0)),            # b2 padded (resident)
            ],
            out_specs=pl.BlockSpec((TB, OUT_PAD), lambda i: (i, 0)),
        ),
        compiler_params=pltpu.CompilerParams(
            dimension_semantics=("parallel",),       # shards batch tiles on v7x's 2 TCs
            vmem_limit_bytes=32 * 1024 * 1024,       # explicit budget (safe on v7x 64 MiB VMEM)
        ),
        cost_estimate=pl.CostEstimate(
            flops=flops, transcendentals=0, bytes_accessed=bytes_accessed),
    )(x3, w_fused, b1_r, w2_pad, b2_pad)

    return out_full[:B, :NUM_CLASSES]


def reference(x, wp, w1, b1, w2, b2):
    # Pure-JAX f32 reference with the original (unfused) structure.
    B, C, H, W = x.shape
    pooled = jnp.mean(x.reshape(B, C, H * W), axis=-1)
    feats = pooled @ wp
    h = jnp.maximum(feats @ w1 + b1, 0.0)
    return h @ w2 + b2


if __name__ == "__main__":
    key = jax.random.PRNGKey(0)
    k_x, k_wp, k_w1, k_b1, k_w2, k_b2 = jax.random.split(key, 6)

    B, C, H, W = 2, 3, 16, 16
    x = jax.random.normal(k_x, (B, C, H, W), dtype=jnp.float32)

    # Deterministic synthetic parameters (not a checkpoint load).
    wp = jax.random.normal(k_wp, (C, IN_FEATURES), dtype=jnp.float32) * 0.05
    w1 = jax.random.normal(k_w1, (IN_FEATURES, HIDDEN_DIM), dtype=jnp.float32) * 0.02
    b1 = jax.random.normal(k_b1, (HIDDEN_DIM,), dtype=jnp.float32) * 0.01
    w2 = jax.random.normal(k_w2, (HIDDEN_DIM, NUM_CLASSES), dtype=jnp.float32) * 0.05
    b2 = jax.random.normal(k_b2, (NUM_CLASSES,), dtype=jnp.float32) * 0.01

    out = baseline_mlp_head(x, wp, w1, b1, w2, b2)
    out = jax.block_until_ready(out)

    ref = reference(x, wp, w1, b1, w2, b2)
    assert out.shape == (B, NUM_CLASSES)
    # bf16 operands + wp@w1 fusion reassociation => relaxed tolerance vs f32 reference.
    assert jnp.allclose(out, ref, atol=1e-2, rtol=1e-1), "mismatch vs pure-JAX reference"

    print("KERNEL_OK")
</pallas_src>

<mosaic_0001>
module attributes {stable_mosaic.version = 11 : i64} {
  func.func @baseline_mlp_head_kernel(%arg0: i32, %arg1: memref<8x3x256xbf16, #tpu.memory_space<vmem>>, %arg2: memref<3x256xbf16, #tpu.memory_space<vmem>>, %arg3: memref<1x256xf32, #tpu.memory_space<vmem>>, %arg4: memref<256x128xbf16, #tpu.memory_space<vmem>>, %arg5: memref<1x128xf32, #tpu.memory_space<vmem>>, %arg6: memref<8x128xf32, #tpu.memory_space<vmem>>) attributes {dimension_semantics = [#tpu.dimension_semantics<parallel>], iteration_bounds = array<i64: 1>, scalar_prefetch = 0 : i64, scratch_operands = 0 : i64, tpu.core_type = #tpu.core_type<tc>, window_params = [{transform_indices = @transform_0, window_bounds = array<i64: 8, 3, 256>}, {pipeline_mode = #tpu.pipeline_mode<synchronous>, transform_indices = @transform_1, window_bounds = array<i64: 3, 256>}, {pipeline_mode = #tpu.pipeline_mode<synchronous>, transform_indices = @transform_2, window_bounds = array<i64: 1, 256>}, {pipeline_mode = #tpu.pipeline_mode<synchronous>, transform_indices = @transform_3, window_bounds = array<i64: 256, 128>}, {pipeline_mode = #tpu.pipeline_mode<synchronous>, transform_indices = @transform_4, window_bounds = array<i64: 1, 128>}, {transform_indices = @transform_5, window_bounds = array<i64: 8, 128>}]} {
    %c0 = arith.constant 0 : index
    %c0_0 = arith.constant 0 : index
    %c0_1 = arith.constant 0 : index
    %0 = vector.load %arg1[%c0, %c0_0, %c0_1] : memref<8x3x256xbf16, #tpu.memory_space<vmem>>, vector<8x3x256xbf16>
    %1 = arith.extf %0 : vector<8x3x256xbf16> to vector<8x3x256xf32>
    %cst = arith.constant dense<0.000000e+00> : vector<8x3xf32>
    %2 = vector.multi_reduction <add>, %1, %cst [2] : vector<8x3x256xf32> to vector<8x3xf32>
    %3 = arith.truncf %2 : vector<8x3xf32> to vector<8x3xbf16>
    %c0_2 = arith.constant 0 : index
    %c0_3 = arith.constant 0 : index
    %4 = vector.load %arg2[%c0_2, %c0_3] : memref<3x256xbf16, #tpu.memory_space<vmem>>, vector<3x256xbf16>
    %cst_4 = arith.constant dense<0.000000e+00> : vector<8x256xf32>
    %5 = tpu.matmul %3, %4, %cst_4 {dimension_numbers = #tpu.dot_dimension_numbers<[1], [0], [0], [1], [0, 0, 1, 1], [], []>} : vector<8x3xbf16>, vector<3x256xbf16>, vector<8x256xf32> -> vector<8x256xf32>
    %c0_5 = arith.constant 0 : index
    %c0_6 = arith.constant 0 : index
    %6 = vector.load %arg3[%c0_5, %c0_6] : memref<1x256xf32, #tpu.memory_space<vmem>>, vector<1x256xf32>
    %7 = vector.broadcast %6 : vector<1x256xf32> to vector<8x256xf32>
    %8 = arith.addf %5, %7 : vector<8x256xf32>
    %cst_7 = arith.constant 0.000000e+00 : f32
    %9 = vector.broadcast %cst_7 : f32 to vector<8x256xf32>
    %10 = arith.maximumf %8, %9 : vector<8x256xf32>
    %11 = arith.truncf %10 : vector<8x256xf32> to vector<8x256xbf16>
    %c0_8 = arith.constant 0 : index
    %c0_9 = arith.constant 0 : index
    %12 = vector.load %arg4[%c0_8, %c0_9] : memref<256x128xbf16, #tpu.memory_space<vmem>>, vector<256x128xbf16>
    %cst_10 = arith.constant dense<0.000000e+00> : vector<8x128xf32>
    %13 = tpu.matmul %11, %12, %cst_10 {dimension_numbers = #tpu.dot_dimension_numbers<[1], [0], [0], [1], [0, 0, 1, 1], [], []>} : vector<8x256xbf16>, vector<256x128xbf16>, vector<8x128xf32> -> vector<8x128xf32>
    %c0_11 = arith.constant 0 : index
    %c0_12 = arith.constant 0 : index
    %14 = vector.load %arg5[%c0_11, %c0_12] : memref<1x128xf32, #tpu.memory_space<vmem>>, vector<1x128xf32>
    %15 = vector.broadcast %14 : vector<1x128xf32> to vector<8x128xf32>
    %16 = arith.addf %13, %15 : vector<8x128xf32>
    %c0_13 = arith.constant 0 : index
    %c0_14 = arith.constant 0 : index
    %17 = vector.load %arg6[%c0_13, %c0_14] : memref<8x128xf32, #tpu.memory_space<vmem>>, vector<8x128xf32>
    tpu.vector_store %arg6[%c0_13, %c0_14], %16 {strides = array<i32>} : memref<8x128xf32, #tpu.memory_space<vmem>>, vector<8x128xf32>,
    return
  }
  func.func @transform_0(%arg0: i32) -> (i32, i32, i32) {
    %c0_i32 = arith.constant 0 : i32
    %c0_i32_0 = arith.constant 0 : i32
    %c0_i32_1 = arith.constant 0 : i32
    return %arg0, %c0_i32, %c0_i32_0 : i32, i32, i32
  }
  func.func @transform_1(%arg0: i32) -> (i32, i32) {
    %c0_i32 = arith.constant 0 : i32
    %c0_i32_0 = arith.constant 0 : i32
    %c0_i32_1 = arith.constant 0 : i32
    return %c0_i32, %c0_i32_0 : i32, i32
  }
  func.func @transform_2(%arg0: i32) -> (i32, i32) {
    %c0_i32 = arith.constant 0 : i32
    %c0_i32_0 = arith.constant 0 : i32
    %c0_i32_1 = arith.constant 0 : i32
    return %c0_i32, %c0_i32_0 : i32, i32
  }
  func.func @transform_3(%arg0: i32) -> (i32, i32) {
    %c0_i32 = arith.constant 0 : i32
    %c0_i32_0 = arith.constant 0 : i32
    %c0_i32_1 = arith.constant 0 : i32
    return %c0_i32, %c0_i32_0 : i32, i32
  }
  func.func @transform_4(%arg0: i32) -> (i32, i32) {
    %c0_i32 = arith.constant 0 : i32
    %c0_i32_0 = arith.constant 0 : i32
    %c0_i32_1 = arith.constant 0 : i32
    return %c0_i32, %c0_i32_0 : i32, i32
  }
  func.func @transform_5(%arg0: i32) -> (i32, i32) {
    %c0_i32 = arith.constant 0 : i32
    %c0_i32_0 = arith.constant 0 : i32
    return %arg0, %c0_i32 : i32, i32
  }
}

</mosaic_0001>

<bundles_post_ra>
// kernel: tpu_custom_call.1
= control target key start
LH: loop header
LB: loop body
LE: loop exit
PB: predicated region body
PF: predicated region fallthrough
CT: control target
= control target key end

     0   :  { %10 = vsyncpa [#allocation3], 0  ;;  %s694_s0 = inlined_call_operand.vmem [shape: bf16[8,3,256], index: 0, kind: input, shape index: {}]   ;;  %s695_s1 = inlined_call_operand.vmem [shape: bf16[3,256], index: 1, kind: input, shape index: {}]   ;;  %s696_s2 = inlined_call_operand.vmem [shape: f32[1,256], index: 2, kind: input, shape index: {}]   ;;  %s697_s3 = inlined_call_operand.hbm [shape: bf16[256,128], index: 3, kind: input, shape index: {}]   ;;  %s698_s4 = inlined_call_operand.vmem [shape: f32[1,128], index: 4, kind: input, shape index: {}]   ;;  %s699_s5 = inlined_call_operand.hbm [shape: f32[8,128], index: 5, kind: output, shape index: {}]  }
   0x1   :  { %11 = vsyncpa [#allocation4], 0  ;;  %s592_s18 = smov [#allocation2]   ;;  %s544_s22 = scalar_lea.hbm %s697_s3, 2048 }
   0x2   :  { %s23_s19 = sshll.u32 %s592_s18, 4  ;;  %p545_p0 = scmp.ne.s32.totalorder %s697_s3, %s544_s22  ;;  %s24_s19 = int_to_ptr.vmem [resolvable:$true] %s23_s19 }
   0x3   :  { %p548_p1 = scmp.lt.u32.totalorder %s544_s22, %s697_s3 }
   0x5   :  { %p550_p2 = pnand %p548_p1, %p545_p0 }
   0x7   :  { %553 = shalt.err (!%p550_p2)
}
   0x8   :  { %s554_s27 = scalar_lea.vmem %s24_s19, 2048  ;;  %p559_p4 = scmp.lt.s32.totalorder %s24_s19, %s24_s19 }
   0x9   :  { %p555_p3 = scmp.ne.s32.totalorder %s24_s19, %s554_s27  ;;  %p560_p5 = scmp.lt.s32.totalorder %s554_s27, %s554_s27 }
   0xb   :  { %p561_p6 = por %p560_p5, %p559_p4 }
   0xd   :  { %p562_p7 = pnand %p561_p6, %p555_p3 }
   0xf   :  { %565 = shalt.err (!%p562_p7)
}
  0x10   :  { %s593_s28 = smov 64   ;;  %s594_s29 = smov 4  }
  0x11   :  { %29 = dma.hbm_to_vmem [thread:$0]  %s697_s3, 2048, %s24_s19, [#allocation3], %s593_s28, %s593_s28, %s594_s29  }
  0x12   :  { %588 = dma.done.wait [#allocation3], 2048  }
  0x13   :  { %589 = vsyncadd [#allocation3], 4294965248  ;;  %v482_v0 = vld [vmem:[%s694_s0] sm:$0xff]   ;;  %vm76_vm0 = vcmask 1042432   ;;  %v497_v1 = vld [vmem:[%s694_s0 + $0x8] sm:$0xff]   ;;  %vm216_vm1 = vcmask 1040384  }
  0x14   :  { %v498_v2 = vld [vmem:[%s694_s0 + $0x10] sm:$0xff]   ;;  %v483_v3 = vunpack.c.l.bf16 %v482_v0  ;;  %v487_v4 = vunpack.c.l.bf16 %v497_v1  ;;  %v484_v5 = vunpack.c.h.bf16 %v482_v0  ;;  %v488_v6 = vunpack.c.h.bf16 %v497_v1  ;;  %v499_v7 = vld [vmem:[%s694_s0 + $0x18] sm:$0xff]   ;;  %v462_v44 = vld.sshfl [vmem:[%s695_s1] sm:$0x33 pattern:$0x76325410] }
  0x15   :  { %v491_v8 = vunpack.c.l.bf16 %v498_v2  ;;  %v492_v9 = vunpack.c.h.bf16 %v498_v2  ;;  %v495_v10 = vunpack.c.l.bf16 %v499_v7  ;;  %v496_v18 = vunpack.c.h.bf16 %v499_v7  ;;  %v528_v52 = vld [vmem:[#allocation2 + $0x40] sm:$0xff]   ;;  %v530_v54 = vld [vmem:[#allocation2 + $0x48] sm:$0xff]   ;;  %v532_v56 = vld [vmem:[#allocation2 + $0x50] sm:$0xff]  }
  0x16   :  { %v60_v11 = vcombine.high %v483_v3, %v483_v3  ;;  %v77_v12 = vsel %vm76_vm0, %v483_v3, 0.0  ;;  %v62_v13 = vcombine.high %v487_v4, %v487_v4  ;;  %v87_v14 = vsel %vm76_vm0, %v487_v4, 0.0  ;;  %v529_v53 = vld [vmem:[#allocation2] sm:$0xff]   ;;  %500 = vmatprep.subr.bf16.mxu1 %v528_v52  ;;  %v531_v55 = vld [vmem:[#allocation2 + $0x8] sm:$0xff]   ;;  %v533_v57 = vld [vmem:[#allocation2 + $0x10] sm:$0xff]  }
  0x17   :  { %v61_v15 = vcombine.high %v484_v5, %v484_v5  ;;  %v82_v16 = vsel %vm76_vm0, %v484_v5, 0.0  ;;  %v63_v17 = vcombine.high %v488_v6, %v488_v6  ;;  %v92_v21 = vsel %vm76_vm0, %v488_v6, 0.0  ;;  %501 = vmatpush3.bf16.msra.mxu1 %v529_v53  ;;  %v534_v58 = vld [vmem:[#allocation2 + $0x58] sm:$0xff]   ;;  %v536_v60 = vld [vmem:[#allocation2 + $0x60] sm:$0xff]   ;;  %v538_v62 = vld [vmem:[#allocation2 + $0x68] sm:$0xff]  }
  0x18   :  { %v78_v19 = vsel %vm76_vm0, %v60_v11, 0.0  ;;  %v88_v20 = vsel %vm76_vm0, %v62_v13, 0.0  ;;  %v64_v22 = vcombine.high %v491_v8, %v491_v8  ;;  %v97_v27 = vsel %vm76_vm0, %v491_v8, 0.0  ;;  %502 = vmatprep.subr.bf16.mxu1 %v530_v54  ;;  %v535_v59 = vld [vmem:[#allocation2 + $0x18] sm:$0xff]   ;;  %v537_v61 = vld [vmem:[#allocation2 + $0x20] sm:$0xff]   ;;  %v539_v63 = vld [vmem:[#allocation2 + $0x28] sm:$0xff]  }
  0x19   :  { %v79_v23 = vadd.f32 %v78_v19, %v77_v12  ;;  %v89_v24 = vadd.f32 %v88_v20, %v87_v14  ;;  %v83_v25 = vsel %vm76_vm0, %v61_v15, 0.0  ;;  %v93_v26 = vsel %vm76_vm0, %v63_v17, 0.0 }
  0x1a   :  { %v65_v28 = vcombine.high %v492_v9, %v492_v9  ;;  %v84_v29 = vadd.f32 %v83_v25, %v82_v16  ;;  %v94_v30 = vadd.f32 %v93_v26, %v92_v21  ;;  %v98_v31 = vsel %vm76_vm0, %v64_v22, 0.0 }
  0x1b   :  { %80 = vadd.xlane.f32.xlu0 %v79_v23  ;;  %90 = vadd.xlane.f32.xlu1 %v89_v24  ;;  %v66_v32 = vcombine.high %v495_v10, %v495_v10  ;;  %v102_v33 = vsel %vm76_vm0, %v492_v9, 0.0  ;;  %v67_v35 = vcombine.high %v496_v18, %v496_v18  ;;  %v107_v36 = vsel %vm76_vm0, %v495_v10, 0.0 }
  0x1c   :  { %v103_v34 = vsel %vm76_vm0, %v65_v28, 0.0  ;;  %v112_v37 = vsel %vm76_vm0, %v496_v18, 0.0  ;;  %v99_v40 = vadd.f32 %v98_v31, %v97_v27  ;;  %v211_v45 = vcombine.high %v462_v44, %v462_v44  ;;  %503 = vmatpush3.bf16.msra.mxu1 %v531_v55 }
  0x1d   :  { %v108_v38 = vsel %vm76_vm0, %v66_v32, 0.0  ;;  %v113_v39 = vsel %vm76_vm0, %v67_v35, 0.0  ;;  %v104_v41 = vadd.f32 %v103_v34, %v102_v33  ;;  %vm217_vm2 = vcmask 1041408   ;;  %504 = vmatprep.subr.bf16.mxu1 %v532_v56 }
  0x1e   :  { %v109_v42 = vadd.f32 %v108_v38, %v107_v36  ;;  %v114_v43 = vadd.f32 %v113_v39, %v112_v37  ;;  %v595_v46 = vmov 65535   ;;  %v596_v51 = vmov 0  }
  0x1f   :  { %85 = vadd.xlane.f32.xlu0 %v84_v29  ;;  %95 = vadd.xlane.f32.xlu1 %v94_v30  ;;  %v218_v47 = vsel %vm216_vm1, 4294967295, %v595_v46  ;;  %v128_v0 = vlaneseq  ;;  %vm188_vm3 = vcmask 1041409   ;;  %vm190_vm4 = vcmask 1042434   ;;  %v542_v46 = vld [vmem:[#allocation2 + $0x78] sm:$0xff]  }
  0x20   :  { %v219_v48 = vsel %vm217_vm2, %v218_v47, 0  ;;  %258 = vmatprep.mubr.bf16.mxu0 %v596_v51  ;;  %505 = vmatpush3.bf16.msra.mxu1 %v533_v57  ;;  %vm192_vm5 = vcmask 1043459   ;;  %vm194_vm6 = vcmask 1044484   ;;  %vm196_vm7 = vcmask 1045509   ;;  %v543_v47 = vld [vmem:[#allocation2 + $0x38] sm:$0xff]  }
  0x21   :  { %v224_v49 = vand.u32 %v219_v48, %v211_v45  ;;  %v221_v50 = vand.u32 %v462_v44, %v219_v48  ;;  %506 = vmatprep.subr.bf16.mxu1 %v534_v58  ;;  %v671_v1 = vshrl.u32 %v128_v0, 7  ;;  %v155_v2 = vand.u32 127, %v128_v0  ;;  %v540_v44 = vld [vmem:[#allocation2 + $0x70] sm:$0xff]   ;;  %v464_v0 = vld [vmem:[%s698_s4] ss:$0 sm:$0xff] }
  0x22   :  { %vm198_vm8 = vcmask 1046534   ;;  %vm200_vm9 = vcmask 1047559   ;;  %vm212_vm10 = vcmask 23552   ;;  %v541_v45 = vld [vmem:[#allocation2 + $0x30] sm:$0xff]  }
  0x23   :  { %100 = vadd.xlane.f32.xlu0 %v99_v40  ;;  %105 = vadd.xlane.f32.xlu1 %v104_v41  ;;  %v158_v7 = vsub.s32 %v155_v2, %v671_v1  ;;  %v130_v48 = vsub.s32 0, %v671_v1 }
  0x24   :  { %226 = vmatprep.subr.bf16.mxu0 %v224_v49  ;;  %507 = vmatpush3.bf16.msra.mxu1 %v535_v59  ;;  %v126_v49 = vld [vmem:[%s696_s2] sm:$0x3]  ;;  %s597_s2 = smov [#allocation5]  }
  0x25   :  { %227 = vmatpush1.bf16.msra.mxu0 %v221_v50  ;;  %508 = vmatprep.subr.bf16.mxu1 %v536_v60  ;;  %v134_v50 = vsub.s32 1, %v671_v1  ;;  %v131_v51 = vrot.slane %v126_v49, %v130_v48  ;;  %s453_s18 = sshll.u32 %s597_s2, 4  ;;  %s454_s18 = int_to_ptr.vmem [resolvable:$true] %s453_s18 }
  0x26   :  { %s566_s19 = scalar_lea.vmem %s454_s18, 128  ;;  %p571_p9 = scmp.lt.s32.totalorder %s454_s18, %s454_s18 }
  0x27   :  { %110 = vadd.xlane.f32.xlu0 %v109_v42  ;;  %115 = vadd.xlane.f32.xlu1 %v114_v43  ;;  %v135_v52 = vrot.slane %v126_v49, %v134_v50  ;;  %p567_p8 = scmp.ne.s32.totalorder %s454_s18, %s566_s19  ;;  %p572_p10 = scmp.lt.s32.totalorder %s566_s19, %s566_s19 }
  0x28   :  { %509 = vmatpush3.bf16.msra.mxu1 %v537_v61 }
  0x29   :  { %510 = vmatprep.subr.bf16.mxu1 %v538_v62  ;;  %p573_p11 = por %p572_p10, %p571_p9 }
  0x2b   :  { %p574_p12 = pnand %p573_p11, %p567_p8 }
  0x2c   :  { %511 = vmatpush3.bf16.msra.mxu1 %v539_v63 }
  0x2d   :  { %512 = vmatprep.subr.bf16.mxu1 %v540_v44 }
  0x30   :  { %513 = vmatpush3.bf16.msra.mxu1 %v541_v45 }
  0x31   :  { %514 = vmatprep.subr.bf16.mxu1 %v542_v46 }
  0x34   :  { %515 = vmatpush3.bf16.msra.mxu1 %v543_v47 }
  0xa8   :  { %v81_v3 = vpop.xlane.xlu0 %80  ;;  %v91_v4 = vpop.xlane.xlu1 %90 }
  0xa9   :  { %v117_v5 = vpack.c.bf16 %v81_v3, %v81_v3  ;;  %v119_v6 = vpack.c.bf16 %v91_v4, %v91_v4 }
  0xab   :  { %v146_v8 = vunpack.c.l.b16 %v117_v5  ;;  %v148_v13 = vunpack.c.l.b16 %v119_v6 }
  0xac   :  { %v86_v9 = vpop.xlane.xlu0 %85  ;;  %v96_v10 = vpop.xlane.xlu1 %95 }
  0xad   :  { %v118_v11 = vpack.c.bf16 %v86_v9, %v86_v9  ;;  %v120_v12 = vpack.c.bf16 %v96_v10, %v96_v10  ;;  %v159_v16 = vrot.slane %v146_v8, %v158_v7  ;;  %v167_v23 = vrot.slane %v148_v13, %v158_v7 }
  0xaf   :  { %v147_v14 = vunpack.c.l.b16 %v118_v11  ;;  %v149_v15 = vunpack.c.l.b16 %v120_v12 }
  0xb0   :  { %v101_v17 = vpop.xlane.xlu0 %100  ;;  %v106_v18 = vpop.xlane.xlu1 %105 }
  0xb1   :  { %v163_v19 = vrot.slane %v147_v14, %v158_v7  ;;  %v171_v20 = vrot.slane %v149_v15, %v158_v7  ;;  %v121_v21 = vpack.c.bf16 %v101_v17, %v101_v17  ;;  %v122_v22 = vpack.c.bf16 %v106_v18, %v106_v18 }
  0xb3   :  { %v189_v24 = vsel %vm188_vm3, %v163_v19, %v159_v16  ;;  %v150_v25 = vunpack.c.l.b16 %v121_v21  ;;  %v151_v26 = vunpack.c.l.b16 %v122_v22 }
  0xb4   :  { %v191_v27 = vsel %vm190_vm4, %v167_v23, %v189_v24  ;;  %v111_v28 = vpop.xlane.xlu0 %110  ;;  %v116_v29 = vpop.xlane.xlu1 %115 }
  0xb5   :  { %v193_v30 = vsel %vm192_vm5, %v171_v20, %v191_v27  ;;  %v175_v31 = vrot.slane %v150_v25, %v158_v7  ;;  %v123_v32 = vpack.c.bf16 %v111_v28, %v111_v28  ;;  %v179_v33 = vrot.slane %v151_v26, %v158_v7 }
  0xb6   :  { %v124_v34 = vpack.c.bf16 %v116_v29, %v116_v29 }
  0xb7   :  { %v195_v35 = vsel %vm194_vm6, %v175_v31, %v193_v30  ;;  %v152_v36 = vunpack.c.l.b16 %v123_v32 }
  0xb8   :  { %v153_v37 = vunpack.c.l.b16 %v124_v34  ;;  %v197_v39 = vsel %vm196_vm7, %v179_v33, %v195_v35 }
  0xb9   :  { %v183_v38 = vrot.slane %v152_v36, %v158_v7 }
  0xba   :  { %v187_v40 = vrot.slane %v153_v37, %v158_v7 }
  0xbb   :  { %v199_v41 = vsel %vm198_vm8, %v183_v38, %v197_v39 }
  0xbc   :  { %v201_v42 = vsel %vm200_vm9, %v187_v40, %v199_v41 }
  0xbd   :  { %v202_v43 = vpack.c.b16 %v201_v42, %v201_v42 }
  0xbf   :  { %463 = vmatmul.mubr.msk.bf16.vlgmr.msra.gmra.mrb[0].mxu0 %vm212_vm10, %v202_v43 }
 0x192   :  { %v260_v53 = vpop.f32.mrb[0].mxu0 }
 0x193   :  { %v261_v54 = vadd.f32 %v260_v53, %v131_v51  ;;  %v262_v55 = vpop.f32.mrb[1].mxu0 }
 0x194   :  { %v263_v56 = vadd.f32 %v262_v55, %v135_v52  ;;  %v264_v57 = vpop.f32.mrb[2].mxu0 }
 0x195   :  { %v267_v58 = vmax.f32 %v261_v54, 0.0  ;;  %v265_v59 = vpop.f32.mrb[3].mxu0 }
 0x196   :  { %v268_v60 = vmax.f32 %v263_v56, 0.0 }
 0x197   :  { %v269_v62 = vpack.c.bf16 %v267_v58, %v267_v58 }
 0x198   :  { %v270_v61 = vpack.c.bf16 %v268_v60, %v268_v60 }
 0x19a   :  { %438 = vmatprep.mubr.bf16.mxu1 %v270_v61 }
 0x19b   :  { %439 = vmatmul.mubr.bf16.vlgmr.msra.gmra.mrb[0].mxu1 %v269_v62 }
 0x26e   :  { %v516_v63 = vpop.f32.mrb[0].mxu1 }
 0x26f   :  { %v517_v1 = vpop.f32.mrb[1].mxu1 }
 0x270   :  { %v518_v2 = vadd.f32 %v517_v1, %v516_v63  ;;  %v519_v3 = vpop.f32.mrb[2].mxu1 }
 0x271   :  { %v520_v4 = vpop.f32.mrb[3].mxu1 }
 0x272   :  { %v441_v5 = vadd.f32 %v518_v2, %v464_v0 }
 0x274   :  { %446 = vst [vmem:[#allocation5] sm:$0xff] %v441_v5 }
 0x275   :  { %577 = shalt.err (!%p574_p12)
}
 0x276   :  { %s578_s4 = scalar_lea.hbm %s699_s5, 128 }
 0x277   :  { %p579_p13 = scmp.ne.s32.totalorder %s699_s5, %s578_s4  ;;  %p582_p0 = scmp.lt.u32.totalorder %s578_s4, %s699_s5 }
 0x279   :  { %p584_p1 = pnand %p582_p0, %p579_p13 }
 0x27b   :  { %587 = shalt.err (!%p584_p1)
}
 0x27c   :  { %456 = dma.vmem_to_hbm [thread:$0]  %s454_s18, 128, %s699_s5, [#allocation4]  }
 0x27d   :  { %590 = dma.done.wait [#allocation4], 128  }
 0x27e   :  { %591 = vsyncadd [#allocation4], 4294967168 }
 0x27f   :  { %460 = vsyncpa [#allocation3], 1 }
 0x280   :  { %461 = vsyncpa [#allocation4], 1 }

</bundles_post_ra>
